<compile_context>
chip_gen: v5e
topology: v5e:2x2
jax: 0.10.0
libtpu: 0.0.40
codegen_flags: <defaults>
</compile_context>

<pallas_src>
import functools

import jax
import jax.numpy as jnp
from jax.experimental import pallas as pl
from jax.experimental.pallas import tpu as pltpu


def _generator_kernel(x_ref, w_ref, b_ref, o_ref):
    # Single fused linear: (TB, 10) @ (10, 784) + (1, 784).
    # The bias add is VPU work fully hidden under the output-tile DMA.
    y = jnp.dot(x_ref[...], w_ref[...], preferred_element_type=jnp.float32)
    o_ref[...] = (y + b_ref[...]).astype(o_ref.dtype)


def _round_up(n, m):
    return ((n + m - 1) // m) * m


_TB_CAP = 2048  # rows per batch tile (fits raised scoped-VMEM limit everywhere)


def _choose_tiling(B):
    """Pick (tile_rows, num_tiles) with <= ~8*num_tiles rows of padding."""
    b8 = _round_up(B, 8)                 # f32 sublane granularity
    n = pl.cdiv(b8, _TB_CAP)             # enough tiles to keep each <= cap
    if b8 > 8:
        n = max(n, 2)                    # v7x: >= 2 parallel steps -> both TCs
    if n > 1 and (n % 2):
        n += 1                           # even step count -> balanced TC split
    tb = _round_up(pl.cdiv(b8, n), 8)
    n = pl.cdiv(b8, tb)                  # recompute after rounding tile up
    return tb, n


def _fused_forward(x, w_fused, b_fused):
    """x: (B, 10) f32; w_fused: (10, 784); b_fused: (1, 784) -> (B, 1, 28, 28)."""
    B, in_features = x.shape
    out_features = w_fused.shape[1]

    if B == 0:
        return jnp.zeros((0, 1, 28, 28), jnp.float32)

    tb, n_tiles = _choose_tiling(B)
    B_pad = tb * n_tiles
    if B_pad != B:
        x = jnp.pad(x, ((0, B_pad - B), (0, 0)))

    y = pl.pallas_call(
        _generator_kernel,
        out_shape=jax.ShapeDtypeStruct((B_pad, out_features), jnp.float32),
        grid_spec=pltpu.PrefetchScalarGridSpec(
            num_scalar_prefetch=0,
            grid=(n_tiles,),
            in_specs=[
                # batch-tiled input
                pl.BlockSpec((tb, in_features), lambda i: (i, 0)),
                # fused weight / bias: same block every step -> resident
                pl.BlockSpec((in_features, out_features), lambda i: (0, 0)),
                pl.BlockSpec((1, out_features), lambda i: (0, 0)),
            ],
            out_specs=pl.BlockSpec((tb, out_features), lambda i: (i, 0)),
        ),
        compiler_params=pltpu.CompilerParams(
            dimension_semantics=("parallel",),
            vmem_limit_bytes=40 << 20,
        ),
        cost_estimate=pl.CostEstimate(
            flops=2 * B_pad * in_features * out_features,
            transcendentals=0,
            bytes_accessed=4 * (B_pad * out_features
                                + B_pad * in_features
                                + in_features * out_features
                                + out_features),
        ),
    )(x, w_fused, b_fused)

    if B_pad != B:
        y = y[:B]
    # Equivalent of torch .view(-1, 1, 28, 28) (NCHW).
    return y.reshape(-1, 1, 28, 28)


def make_generator_forward(w1, b1, w2, b2):
    """Pre-fuse the two linears once per weight set and return a jitted forward.

    w1: (50, 10); b1: (50,); w2: (784, 50); b2: (784,).
    """
    #   y = (x @ w1.T + b1) @ w2.T + b2 = x @ (w1.T @ w2.T) + (b1 @ w2.T + b2)
    w_fused = jnp.dot(w1.T, w2.T)                       # (10, 784)
    b_fused = (jnp.dot(b1, w2.T) + b2).reshape(1, -1)   # (1, 784)
    return jax.jit(
        functools.partial(_fused_forward, w_fused=w_fused, b_fused=b_fused)
    )


def generator_forward(x, w1, b1, w2, b2):
    """One-shot convenience wrapper (re-fuses weights each call; prefer
    make_generator_forward for repeated inference with fixed weights)."""
    w_fused = jnp.dot(w1.T, w2.T)
    b_fused = (jnp.dot(b1, w2.T) + b2).reshape(1, -1)
    return _fused_forward(x, w_fused, b_fused)


def init_params(key):
    """Deterministic init mimicking nn.Linear's default (uniform +/- 1/sqrt(fan_in))."""
    k1, k2, k3, k4 = jax.random.split(key, 4)
    bound1 = 1.0 / jnp.sqrt(10.0)
    bound2 = 1.0 / jnp.sqrt(50.0)
    w1 = jax.random.uniform(k1, (50, 10), jnp.float32, -bound1, bound1)
    b1 = jax.random.uniform(k2, (50,), jnp.float32, -bound1, bound1)
    w2 = jax.random.uniform(k3, (28 * 28, 50), jnp.float32, -bound2, bound2)
    b2 = jax.random.uniform(k4, (28 * 28,), jnp.float32, -bound2, bound2)
    return w1, b1, w2, b2


if __name__ == "__main__":
    key = jax.random.PRNGKey(0)
    k_x, k_x2, k_p = jax.random.split(key, 3)

    w1, b1, w2, b2 = init_params(k_p)
    forward = make_generator_forward(w1, b1, w2, b2)  # weights fused once

    # Small batch (single grid step path).
    B = 2
    x = jax.random.normal(k_x, (B, 10), jnp.float32)
    out = jax.block_until_ready(forward(x))
    ref = ((x @ w1.T + b1) @ w2.T + b2).reshape(-1, 1, 28, 28)
    assert out.shape == (B, 1, 28, 28), out.shape
    assert jnp.allclose(out, ref, atol=1e-4, rtol=1e-4)

    # Ragged batch (multi-step grid + padding-slice path).
    B2 = 100
    x2 = jax.random.normal(k_x2, (B2, 10), jnp.float32)
    out2 = jax.block_until_ready(forward(x2))
    ref2 = ((x2 @ w1.T + b1) @ w2.T + b2).reshape(-1, 1, 28, 28)
    assert out2.shape == (B2, 1, 28, 28), out2.shape
    assert jnp.allclose(out2, ref2, atol=1e-4, rtol=1e-4)

    print("KERNEL_OK")
</pallas_src>

<mosaic_0001>
module attributes {stable_mosaic.version = 11 : i64} {
  func.func @_generator_kernel(%arg0: i32, %arg1: memref<8x10xf32, #tpu.memory_space<vmem>>, %arg2: memref<10x784xf32, #tpu.memory_space<vmem>>, %arg3: memref<1x784xf32, #tpu.memory_space<vmem>>, %arg4: memref<8x784xf32, #tpu.memory_space<vmem>>) attributes {dimension_semantics = [#tpu.dimension_semantics<parallel>], iteration_bounds = array<i64: 1>, scalar_prefetch = 0 : i64, scratch_operands = 0 : i64, tpu.core_type = #tpu.core_type<tc>, window_params = [{transform_indices = @transform_0, window_bounds = array<i64: 8, 10>}, {pipeline_mode = #tpu.pipeline_mode<synchronous>, transform_indices = @transform_1, window_bounds = array<i64: 10, 784>}, {pipeline_mode = #tpu.pipeline_mode<synchronous>, transform_indices = @transform_2, window_bounds = array<i64: 1, 784>}, {transform_indices = @transform_3, window_bounds = array<i64: 8, 784>}]} {
    %c0 = arith.constant 0 : index
    %c0_0 = arith.constant 0 : index
    %0 = vector.load %arg1[%c0, %c0_0] : memref<8x10xf32, #tpu.memory_space<vmem>>, vector<8x10xf32>
    %c0_1 = arith.constant 0 : index
    %c0_2 = arith.constant 0 : index
    %1 = vector.load %arg2[%c0_1, %c0_2] : memref<10x784xf32, #tpu.memory_space<vmem>>, vector<10x784xf32>
    %cst = arith.constant dense<0.000000e+00> : vector<8x784xf32>
    %2 = tpu.matmul %0, %1, %cst {dimension_numbers = #tpu.dot_dimension_numbers<[1], [0], [0], [1], [0, 0, 1, 1], [], []>} : vector<8x10xf32>, vector<10x784xf32>, vector<8x784xf32> -> vector<8x784xf32>
    %c0_3 = arith.constant 0 : index
    %c0_4 = arith.constant 0 : index
    %3 = vector.load %arg3[%c0_3, %c0_4] : memref<1x784xf32, #tpu.memory_space<vmem>>, vector<1x784xf32>
    %4 = vector.broadcast %3 : vector<1x784xf32> to vector<8x784xf32>
    %5 = arith.addf %2, %4 : vector<8x784xf32>
    %c0_5 = arith.constant 0 : index
    %c0_6 = arith.constant 0 : index
    %6 = vector.load %arg4[%c0_5, %c0_6] : memref<8x784xf32, #tpu.memory_space<vmem>>, vector<8x784xf32>
    tpu.vector_store %arg4[%c0_5, %c0_6], %5 {strides = array<i32>} : memref<8x784xf32, #tpu.memory_space<vmem>>, vector<8x784xf32>,
    return
  }
  func.func @transform_0(%arg0: i32) -> (i32, i32) {
    %c0_i32 = arith.constant 0 : i32
    %c0_i32_0 = arith.constant 0 : i32
    return %arg0, %c0_i32 : i32, i32
  }
  func.func @transform_1(%arg0: i32) -> (i32, i32) {
    %c0_i32 = arith.constant 0 : i32
    %c0_i32_0 = arith.constant 0 : i32
    %c0_i32_1 = arith.constant 0 : i32
    return %c0_i32, %c0_i32_0 : i32, i32
  }
  func.func @transform_2(%arg0: i32) -> (i32, i32) {
    %c0_i32 = arith.constant 0 : i32
    %c0_i32_0 = arith.constant 0 : i32
    %c0_i32_1 = arith.constant 0 : i32
    return %c0_i32, %c0_i32_0 : i32, i32
  }
  func.func @transform_3(%arg0: i32) -> (i32, i32) {
    %c0_i32 = arith.constant 0 : i32
    %c0_i32_0 = arith.constant 0 : i32
    return %arg0, %c0_i32 : i32, i32
  }
}

</mosaic_0001>

<bundles_post_ra>
// kernel: _fused_forward.1
= control target key start
LH: loop header
LB: loop body
LE: loop exit
PB: predicated region body
PF: predicated region fallthrough
CT: control target
= control target key end

     0   :  { %8 = vsyncpa [#allocation3], 0  ;;  %s283_s15 = smov [#allocation2]   ;;  %s284_s17 = smov 896   ;;  %s350_s0 = inlined_call_operand.vmem [shape: f32[8,10], index: 0, kind: input, shape index: {}]   ;;  %s351_s1 = inlined_call_operand.hbm [shape: f32[10,784], index: 1, kind: input, shape index: {}]   ;;  %s352_s2 = inlined_call_operand.vmem [shape: f32[1,784], index: 2, kind: input, shape index: {}]   ;;  %s353_s3 = inlined_call_operand.vmem [shape: f32[8,784], index: 3, kind: output, shape index: {}]  }
   0x1   :  { %s15_s14 = sshll.u32 %s351_s1, 4  ;;  %s17_s16 = sshll.u32 %s283_s15, 4  ;;  %s16_s14 = int_to_ptr.hbm [resolvable:$true] %s15_s14  ;;  %s18_s16 = int_to_ptr.vmem [resolvable:$true] %s17_s16 }
   0x2   :  { %s285_s18 = smov 56  }
   0x3   :  { %23 = dma.hbm_to_vmem [thread:$0]  %s16_s14, 1792, %s18_s16, [#allocation3], %s284_s17, %s284_s17, %s285_s18  }
   0x4   :  { %281 = dma.done.wait [#allocation3], 1792  }
   0x5   :  { %282 = vsyncadd [#allocation3], 4294965504  ;;  %vm65_vm0 = vcmask 1041408   ;;  %v40_v0 = vld [vmem:[#allocation2 + $0x48] sm:$0x3]  ;;  %v33_v1 = vld [vmem:[#allocation2 + $0x10] sm:$0xff] }
   0x6   :  { %244 = vmatpush.msk.msra.mxu2 %vm65_vm0, %v40_v0  ;;  %v30_v2 = vld [vmem:[%s350_s0] sm:$0xff]  ;;  %vm61_vm1 = vcmask 80896   ;;  %v38_v3 = vld [vmem:[#allocation2 + $0x38] sm:$0x3]  ;;  %v44_v5 = vld [vmem:[#allocation2 + $0x68] sm:$0x3] }
   0x7   :  { %v39_v4 = vld [vmem:[#allocation2 + $0x40] sm:$0x3]  ;;  %240 = vmatpush.msk.msra.mxu0 %vm65_vm0, %v38_v3  ;;  %v32_v7 = vld [vmem:[#allocation2 + $0x8] sm:$0xff]  ;;  %v41_v8 = vld [vmem:[#allocation2 + $0x50] sm:$0x3]  ;;  %vm233_vm2 = vcmask 130048  }
   0x8   :  { %242 = vmatpush.msk.msra.mxu1 %vm65_vm0, %v39_v4  ;;  %v31_v6 = vld [vmem:[#allocation2] sm:$0xff]  ;;  %142 = vmatpush.msra.mxu2 %v33_v1  ;;  %v37_v9 = vld [vmem:[#allocation2 + $0x30] sm:$0xff]  ;;  %v42_v10 = vld [vmem:[#allocation2 + $0x58] sm:$0x3] }
   0x9   :  { %245 = vmatmul.msk.f32.vlgmr.msra.gmra.mxu2 %vm61_vm1, %v30_v2  ;;  %102 = vmatpush.msra.mxu0 %v31_v6  ;;  %v43_v11 = vld [vmem:[#allocation2 + $0x60] sm:$0x3]  ;;  %v34_v12 = vld [vmem:[#allocation2 + $0x18] sm:$0xff]  ;;  %v36_v14 = vld [vmem:[#allocation2 + $0x28] sm:$0xff] }
   0xa   :  { %252 = vmatpush.msk.msrb.mxu2 %vm65_vm0, %v44_v5  ;;  %122 = vmatpush.msra.mxu1 %v32_v7  ;;  %v35_v13 = vld [vmem:[#allocation2 + $0x20] sm:$0xff] }
   0xb   :  { %246 = vmatpush.msk.msra.mxu3 %vm65_vm0, %v41_v8  ;;  %241 = vmatmul.msk.f32.vlgmr.msra.gmra.mxu0 %vm61_vm1, %v30_v2  ;;  %v45_v15 = vld [vmem:[%s352_s2] sm:$0x7f] }
   0xc   :  { %222 = vmatpush.msrb.mxu2 %v37_v9  ;;  %243 = vmatmul.msk.f32.vlgmr.msra.gmra.mxu1 %vm61_vm1, %v30_v2  ;;  %v47_v16 = vperm.slane %v45_v15, 0  ;;  %v48_v17 = vperm.slane %v45_v15, 1  ;;  %v49_v21 = vperm.slane %v45_v15, 2  ;;  %v51_v25 = vperm.slane %v45_v15, 4 }
   0xd   :  { %248 = vmatpush.msk.msrb.mxu0 %vm65_vm0, %v42_v10  ;;  %250 = vmatpush.msk.msrb.mxu1 %vm65_vm0, %v43_v11  ;;  %v52_v26 = vperm.slane %v45_v15, 5  ;;  %v50_v27 = vperm.slane %v45_v15, 3  ;;  %v53_v31 = vperm.slane %v45_v15, 6 }
   0xe   :  { %162 = vmatpush.msra.mxu3 %v34_v12 }
   0xf   :  { %247 = vmatmul.msk.f32.vlgmr.msra.gmra.mxu3 %vm61_vm1, %v30_v2  ;;  %182 = vmatpush.msrb.mxu0 %v35_v13 }
  0x10   :  { %202 = vmatpush.msrb.mxu1 %v36_v14 }
  0x11   :  { %253 = vmatmul.msk.f32.vlgmr.msrb.gmra.mxu2 %vm61_vm1, %v30_v2 }
  0x13   :  { %249 = vmatmul.msk.f32.vlgmr.msrb.gmra.mxu0 %vm61_vm1, %v30_v2 }
  0x14   :  { %251 = vmatmul.msk.f32.vlgmr.msrb.gmra.mxu1 %vm61_vm1, %v30_v2 }
  0x88   :  { %v104_v18 = vpop.f32.mrf.mxu0 }
  0x89   :  { %v105_v19 = vadd.f32 %v104_v18, %v47_v16  ;;  %v124_v20 = vpop.f32.mrf.mxu1 }
  0x8a   :  { %v125_v22 = vadd.f32 %v124_v20, %v48_v17 }
  0x8b   :  { %227 = vst [vmem:[%s353_s3] sm:$0xff] %v105_v19 }
  0x8c   :  { %228 = vst [vmem:[%s353_s3 + $0x8] sm:$0xff] %v125_v22  ;;  %v144_v23 = vpop.f32.mrf.mxu2 }
  0x8d   :  { %v145_v24 = vadd.f32 %v144_v23, %v49_v21 }
  0x8f   :  { %229 = vst [vmem:[%s353_s3 + $0x10] sm:$0xff] %v145_v24 }
  0x90   :  { %v184_v28 = vpop.f32.mrf.mxu0 }
  0x91   :  { %v185_v29 = vadd.f32 %v184_v28, %v51_v25  ;;  %v204_v30 = vpop.f32.mrf.mxu1 }
  0x92   :  { %v164_v32 = vpop.f32.mrf.mxu3  ;;  %v205_v33 = vadd.f32 %v204_v30, %v52_v26 }
  0x93   :  { %v165_v34 = vadd.f32 %v164_v32, %v50_v27  ;;  %231 = vst [vmem:[%s353_s3 + $0x20] sm:$0xff] %v185_v29 }
  0x94   :  { %232 = vst [vmem:[%s353_s3 + $0x28] sm:$0xff] %v205_v33  ;;  %v224_v35 = vpop.f32.mrf.mxu2 }
  0x95   :  { %230 = vst [vmem:[%s353_s3 + $0x18] sm:$0xff] %v165_v34  ;;  %v225_v36 = vadd.f32 %v224_v35, %v53_v31 }
  0x97   :  { %234 = vst.msk [vmem:[%s353_s3 + $0x30] sm:$0xff] %vm233_vm2, %v225_v36 }
  0x98   :  { %239 = vsyncpa [#allocation3], 1 }

</bundles_post_ra>
